<compile_context>
chip_gen: v5e
topology: v5e:2x2
jax: 0.10.0
libtpu: 0.0.40
codegen_flags: <defaults>
</compile_context>

<pallas_src>
import jax
import jax.numpy as jnp
from jax.experimental import pallas as pl
from jax.experimental.pallas import tpu as pltpu


def _round_up(x, m):
    return ((x + m - 1) // m) * m


_VMEM_CAP = 48 * 1024 * 1024  # safe on v7x (64 MiB per TC); ample slack on v5e/v6e (128 MiB)


def _vmem_need_bytes(tile_n, k, e, x_itemsize):
    """Estimate pipeline VMEM use (Mosaic lane-pads last dims to 128 internally)."""
    kp = _round_up(k, 128)
    ep = _round_up(e, 128)
    return (2 * tile_n * kp * x_itemsize      # double-buffered x tile (native dtype)
            + 2 * tile_n * ep * 4             # double-buffered f32 out tile
            + 2 * kp * ep * 4                 # weight (constant index_map -> resident)
            + 2 * 8 * ep * 4)                 # bias row


def linear_kernel(x_ref, w_ref, b_ref, o_ref):
    """x_ref: (TN, K) native dtype, w_ref: (K, E) f32, b_ref: (1, E) f32, o_ref: (TN, E) f32."""
    x = x_ref[...].astype(jnp.float32)        # x.float() done in-kernel (hidden under DMA)
    o_ref[...] = (
        jnp.dot(x, w_ref[...], preferred_element_type=jnp.float32) + b_ref[...]
    )


def prepare_linear_params(weight, bias):
    """One-time parameter prep (hoisted out of the per-call path):
    W (emb_dim, dim_in) -> (dim_in, emb_dim) f32, bias -> (1, emb_dim) f32."""
    w_t = weight.astype(jnp.float32).T
    b_row = bias.astype(jnp.float32).reshape(1, -1)
    return w_t, b_row


def linear_node_encoder_pallas(x, w_t, b_row, *, tile_n=1024):
    """x: (N, dim_in) any dtype, w_t: (dim_in, emb_dim) f32, b_row: (1, emb_dim) f32
    -> (N, emb_dim) f32.  Equivalent to torch.nn.Linear(dim_in, emb_dim)(x.float())."""
    n, k = x.shape
    k2, e = w_t.shape
    assert k == k2, "weight/in-feature mismatch"
    assert b_row.shape == (1, e), "bias/out-feature mismatch"

    itemsize = jnp.dtype(x.dtype).itemsize

    # Node-tile size: multiple of 8 sublanes, no larger than the (8-padded) node count,
    # shrunk until the double-buffered tiles fit comfortably inside the VMEM cap.
    n8 = _round_up(max(n, 1), 8)
    tile_n = max(8, min(_round_up(tile_n, 8), n8))
    while tile_n > 8 and _vmem_need_bytes(tile_n, k, e, itemsize) > _VMEM_CAP // 2:
        tile_n //= 2
    # Prefer >=2 node tiles when there is enough work (v7x has 2 TensorCores).
    if tile_n == n8 and n8 >= 512:
        tile_n = _round_up(-(-n8 // 2), 8)

    n_pad = _round_up(n, tile_n)
    x_p = x if n_pad == n else jnp.pad(x, ((0, n_pad - n), (0, 0)))

    vmem_limit = int(min(_VMEM_CAP,
                         max(16 * 1024 * 1024,
                             2 * _vmem_need_bytes(tile_n, k, e, itemsize))))

    grid = (n_pad // tile_n,)
    out_p = pl.pallas_call(
        linear_kernel,
        out_shape=jax.ShapeDtypeStruct((n_pad, e), jnp.float32),
        grid_spec=pltpu.PrefetchScalarGridSpec(
            num_scalar_prefetch=0,
            grid=grid,
            in_specs=[
                # per-tile slab of node features, native dtype, K unpadded in HBM
                # (last block dim == full array dim -> legal; lane-padded only in VMEM)
                pl.BlockSpec((tile_n, k), lambda i: (i, 0)),
                # full weight, constant index_map -> stays resident across node tiles
                pl.BlockSpec((k, e), lambda i: (0, 0)),
                # bias row, resident across node tiles
                pl.BlockSpec((1, e), lambda i: (0, 0)),
            ],
            out_specs=pl.BlockSpec((tile_n, e), lambda i: (i, 0)),
        ),
        compiler_params=pltpu.CompilerParams(
            dimension_semantics=("parallel",),
            vmem_limit_bytes=vmem_limit,
        ),
    )(x_p, w_t, b_row)

    # Strip node-axis padding only (no column padding was introduced).
    return out_p if n_pad == n else out_p[:n]


def linear_node_encoder_ref(x, weight, bias):
    """Pure-JAX reference: x.float() @ W.T + b."""
    return jnp.dot(x.astype(jnp.float32), weight.astype(jnp.float32).T) + bias


if __name__ == "__main__":
    # Small synthetic configuration consistent with the module's forward:
    # x: (N, dim_in) node features (integer-valued, cast to float inside),
    # output: (N, emb_dim).
    n_nodes = 16
    dim_in = 9
    emb_dim = 32

    key = jax.random.PRNGKey(0)
    k_x, k_w, k_b = jax.random.split(key, 3)

    # integer node features (the module does x.float() on them)
    x = jax.random.randint(k_x, (n_nodes, dim_in), 0, 10, dtype=jnp.int32)

    # Linear parameters (kaiming-uniform-ish range, deterministic)
    bound = 1.0 / (dim_in ** 0.5)
    weight = jax.random.uniform(k_w, (emb_dim, dim_in), jnp.float32,
                                minval=-bound, maxval=bound)
    bias = jax.random.uniform(k_b, (emb_dim,), jnp.float32,
                              minval=-bound, maxval=bound)

    # One-time layout prep (pre-transposed weight), then the Pallas forward.
    w_t, b_row = prepare_linear_params(weight, bias)
    out = linear_node_encoder_pallas(x, w_t, b_row, tile_n=1024)
    out = jax.block_until_ready(out)

    ref = linear_node_encoder_ref(x, weight, bias)
    assert out.shape == (n_nodes, emb_dim)
    assert jnp.allclose(out, ref, atol=1e-4, rtol=1e-4), "mismatch vs. reference"

    print("KERNEL_OK")
</pallas_src>

<mosaic_0001>
module attributes {stable_mosaic.version = 11 : i64} {
  func.func @linear_kernel(%arg0: i32, %arg1: memref<16x9xi32, #tpu.memory_space<vmem>>, %arg2: memref<9x32xf32, #tpu.memory_space<vmem>>, %arg3: memref<1x32xf32, #tpu.memory_space<vmem>>, %arg4: memref<16x32xf32, #tpu.memory_space<vmem>>) attributes {dimension_semantics = [#tpu.dimension_semantics<parallel>], iteration_bounds = array<i64: 1>, scalar_prefetch = 0 : i64, scratch_operands = 0 : i64, tpu.core_type = #tpu.core_type<tc>, window_params = [{transform_indices = @transform_0, window_bounds = array<i64: 16, 9>}, {pipeline_mode = #tpu.pipeline_mode<synchronous>, transform_indices = @transform_1, window_bounds = array<i64: 9, 32>}, {pipeline_mode = #tpu.pipeline_mode<synchronous>, transform_indices = @transform_2, window_bounds = array<i64: 1, 32>}, {transform_indices = @transform_3, window_bounds = array<i64: 16, 32>}]} {
    %c0 = arith.constant 0 : index
    %c0_0 = arith.constant 0 : index
    %0 = vector.load %arg1[%c0, %c0_0] : memref<16x9xi32, #tpu.memory_space<vmem>>, vector<16x9xi32>
    %1 = arith.sitofp %0 : vector<16x9xi32> to vector<16x9xf32>
    %c0_1 = arith.constant 0 : index
    %c0_2 = arith.constant 0 : index
    %2 = vector.load %arg2[%c0_1, %c0_2] : memref<9x32xf32, #tpu.memory_space<vmem>>, vector<9x32xf32>
    %cst = arith.constant dense<0.000000e+00> : vector<16x32xf32>
    %3 = tpu.matmul %1, %2, %cst {dimension_numbers = #tpu.dot_dimension_numbers<[1], [0], [0], [1], [0, 0, 1, 1], [], []>} : vector<16x9xf32>, vector<9x32xf32>, vector<16x32xf32> -> vector<16x32xf32>
    %c0_3 = arith.constant 0 : index
    %c0_4 = arith.constant 0 : index
    %4 = vector.load %arg3[%c0_3, %c0_4] : memref<1x32xf32, #tpu.memory_space<vmem>>, vector<1x32xf32>
    %5 = vector.broadcast %4 : vector<1x32xf32> to vector<16x32xf32>
    %6 = arith.addf %3, %5 : vector<16x32xf32>
    %c0_5 = arith.constant 0 : index
    %c0_6 = arith.constant 0 : index
    %7 = vector.load %arg4[%c0_5, %c0_6] : memref<16x32xf32, #tpu.memory_space<vmem>>, vector<16x32xf32>
    tpu.vector_store %arg4[%c0_5, %c0_6], %6 {strides = array<i32>} : memref<16x32xf32, #tpu.memory_space<vmem>>, vector<16x32xf32>,
    return
  }
  func.func @transform_0(%arg0: i32) -> (i32, i32) {
    %c0_i32 = arith.constant 0 : i32
    %c0_i32_0 = arith.constant 0 : i32
    return %arg0, %c0_i32 : i32, i32
  }
  func.func @transform_1(%arg0: i32) -> (i32, i32) {
    %c0_i32 = arith.constant 0 : i32
    %c0_i32_0 = arith.constant 0 : i32
    %c0_i32_1 = arith.constant 0 : i32
    return %c0_i32, %c0_i32_0 : i32, i32
  }
  func.func @transform_2(%arg0: i32) -> (i32, i32) {
    %c0_i32 = arith.constant 0 : i32
    %c0_i32_0 = arith.constant 0 : i32
    %c0_i32_1 = arith.constant 0 : i32
    return %c0_i32, %c0_i32_0 : i32, i32
  }
  func.func @transform_3(%arg0: i32) -> (i32, i32) {
    %c0_i32 = arith.constant 0 : i32
    %c0_i32_0 = arith.constant 0 : i32
    return %arg0, %c0_i32 : i32, i32
  }
}

</mosaic_0001>

<bundles_post_ra>
// kernel: tpu_custom_call.1
= control target key start
LH: loop header
LB: loop body
LE: loop exit
PB: predicated region body
PF: predicated region fallthrough
CT: control target
= control target key end

     0   :  { %8 = vsyncpa [#allocation3], 0  ;;  %s249_s0 = inlined_call_operand.hbm [shape: s32[16,9], index: 0, kind: input, shape index: {}]   ;;  %s250_s1 = inlined_call_operand.hbm [shape: f32[9,32], index: 1, kind: input, shape index: {}]   ;;  %s251_s2 = inlined_call_operand.vmem [shape: f32[1,32], index: 2, kind: input, shape index: {}]   ;;  %s252_s3 = inlined_call_operand.hbm [shape: f32[16,32], index: 3, kind: output, shape index: {}]  }
   0x1   :  { %9 = vsyncpa [#allocation6], 0 }
   0x2   :  { %10 = vsyncpa [#allocation4], 0  ;;  %s15_s14 = sshll.u32 %s249_s0, 4  ;;  %s203_s15 = smov [#allocation2]   ;;  %s16_s14 = int_to_ptr.hbm [resolvable:$true] %s15_s14 }
   0x3   :  { %s17_s16 = sshll.u32 %s203_s15, 4  ;;  %s28_s19 = sshll.u32 %s250_s1, 4  ;;  %s18_s16 = int_to_ptr.vmem [resolvable:$true] %s17_s16  ;;  %s29_s19 = int_to_ptr.hbm [resolvable:$true] %s28_s19 }
   0x4   :  { %s204_s20 = smov 128   ;;  %s205_s21 = smov 8  }
   0x5   :  { %23 = dma.hbm_to_vmem [thread:$0]  %s16_s14, 256, %s18_s16, [#allocation3], %s204_s20, %s204_s20, %s205_s21  }
   0x6   :  { %s206_s22 = smov [#allocation5]  }
   0x7   :  { %s30_s23 = sshll.u32 %s206_s22, 4  ;;  %s31_s23 = int_to_ptr.vmem [resolvable:$true] %s30_s23 }
   0x8   :  { %36 = dma.hbm_to_vmem [thread:$0]  %s29_s19, 256, %s31_s23, [#allocation6], %s204_s20, %s204_s20, %s205_s21  }
   0x9   :  { %197 = dma.done.wait [#allocation3], 256  }
   0xa   :  { %198 = vsyncadd [#allocation3], 4294967040 }
   0xb   :  { %199 = dma.done.wait [#allocation6], 256  }
   0xc   :  { %200 = vsyncadd [#allocation6], 4294967040  ;;  %vm64_vm0 = vcmask 1040384   ;;  %v52_v0 = vld [vmem:[#allocation5 + $0x8] sm:$0x1]  ;;  %v51_v1 = vld [vmem:[#allocation5] sm:$0xff] }
   0xd   :  { %v47_v2 = vld [vmem:[#allocation2] sm:$0xff]  ;;  %114 = vmatpush.msk.msra.mxu0 %vm64_vm0, %v52_v0  ;;  %117 = vmatpush.msk.msra.mxu1 %vm64_vm0, %v52_v0  ;;  %vm57_vm1 = vcmask 72704   ;;  %v48_v4 = vld [vmem:[#allocation2 + $0x8] sm:$0xff]  ;;  %s207_s24 = smov [#allocation7]   ;;  %s100_s28 = sshll.u32 %s252_s3, 4  ;;  %vm91_vm2 = vcmask 261120   ;;  %s101_s28 = int_to_ptr.hbm [resolvable:$true] %s100_s28 }
   0xe   :  { %v49_v3 = vcvt.s32.f32 %v47_v2  ;;  %v50_v5 = vcvt.s32.f32 %v48_v4  ;;  %v124_v6 = vld [vmem:[%s251_s2] ss:$0 sm:$0xff]  ;;  %s98_s25 = sshll.u32 %s207_s24, 4  ;;  %s99_s25 = int_to_ptr.vmem [resolvable:$true] %s98_s25 }
   0xf   :  { %83 = vmatpush.msra.mxu0 %v51_v1  ;;  %118 = vmatpush.msra.mxu1 %v51_v1 }
  0x10   :  { %115 = vmatmul.msk.f32.vlgmr.msra.gmra.mxu0 %vm57_vm1, %v49_v3  ;;  %116 = vmatmul.msk.f32.vlgmr.msra.gmra.mxu1 %vm57_vm1, %v50_v5 }
  0x8d   :  { %v85_v7 = vpop.f32.mrf.mxu0  ;;  %v88_v8 = vpop.f32.mrf.mxu1 }
  0x8e   :  { %v86_v9 = vadd.f32 %v124_v6, %v85_v7  ;;  %v89_v10 = vadd.f32 %v124_v6, %v88_v8 }
  0x90   :  { %92 = vst.msk [vmem:[#allocation7] sm:$0xff] %vm91_vm2, %v86_v9 }
  0x91   :  { %93 = vst.msk [vmem:[#allocation7 + $0x8] sm:$0xff] %vm91_vm2, %v89_v10 }
  0x92   :  { %106 = dma.vmem_to_hbm [thread:$0]  %s99_s25, 256, %s101_s28, [#allocation4], %s204_s20, %s204_s20, %s205_s21  }
  0x93   :  { %201 = dma.done.wait [#allocation4], 256  }
  0x94   :  { %202 = vsyncadd [#allocation4], 4294967040 }
  0x95   :  { %111 = vsyncpa [#allocation3], 1 }
  0x96   :  { %112 = vsyncpa [#allocation6], 1 }
  0x97   :  { %113 = vsyncpa [#allocation4], 1 }

</bundles_post_ra>
